<compile_context>
chip_gen: v6e
topology: v6e:2x2x1
jax: 0.10.0
libtpu: 0.0.40
codegen_flags: <defaults>
</compile_context>

<pallas_src>
import math
import numpy as np
import jax
import jax.numpy as jnp
from jax.experimental import pallas as pl
from jax.experimental.pallas import tpu as pltpu


# ------------------------- schedule (glue, numpy float64 like torch) -------------------------
def cosine_beta_schedule(timesteps, s=0.008):
    steps = timesteps + 1
    x = np.linspace(0, timesteps, steps, dtype=np.float64)
    alphas_cumprod = np.cos((x / timesteps + s) / (1 + s) * math.pi * 0.5) ** 2
    alphas_cumprod = alphas_cumprod / alphas_cumprod[0]
    betas = 1.0 - alphas_cumprod[1:] / alphas_cumprod[:-1]
    return np.clip(betas, 0.0, 0.999)


def make_diffusion_constants(timesteps=1000, p2_loss_weight_gamma=0.0, p2_loss_weight_k=1.0):
    betas = cosine_beta_schedule(timesteps)
    alphas = 1.0 - betas
    alphas_cumprod = np.cumprod(alphas, axis=0)
    return dict(
        sqrt_alphas_cumprod=jnp.asarray(np.sqrt(alphas_cumprod), dtype=jnp.float32),
        sqrt_one_minus_alphas_cumprod=jnp.asarray(np.sqrt(1.0 - alphas_cumprod), dtype=jnp.float32),
        p2_loss_weight=jnp.asarray(
            (p2_loss_weight_k + alphas_cumprod / (1.0 - alphas_cumprod)) ** (-p2_loss_weight_gamma),
            dtype=jnp.float32,
        ),
    )


# ------------------------------------ tiling helpers ------------------------------------
def _vmem_capacity_bytes(default=64 * 1024 * 1024):
    """Per-core VMEM capacity; conservative (v7x) fallback if the query is unavailable."""
    try:
        info = pltpu.get_tpu_info()
        cap = getattr(info, "vmem_capacity_bytes", None)
        if cap:
            return int(cap)
    except Exception:
        pass
    return default


def _padded_sublanes(c, itemsize):
    """Sublane extent a (c, lanes) block actually occupies in VMEM (8/16/32 for 4/2/1 B)."""
    native = 8 * max(1, 4 // itemsize)
    return ((c + native - 1) // native) * native


def _pick_tile_hw(hw_pad, c, itemsize, vmem_bytes, max_lanes=512 * 1024):
    """Largest lane-dense tile (multiple of 128) dividing hw_pad that double-buffers in VMEM."""
    pad_sub = _padded_sublanes(c, itemsize)
    bytes_per_lane = 2 * 2 * pad_sub * itemsize          # 2 inputs x 2 pipeline buffers
    budget = int(vmem_bytes * 0.55)                      # leave room for out/scratch/compiler
    cap = max(128, min(max_lanes, (budget // bytes_per_lane) // 128 * 128))
    if hw_pad <= cap:
        return hw_pad
    for tile in range(cap, 127, -128):
        if hw_pad % tile == 0:
            return tile
    return 128


def _pick_chunk(tile, chunk_lanes=512):
    """In-kernel chunk size (multiple of 128, divides tile) to bound vreg pressure."""
    chunk = max(128, (min(chunk_lanes, tile) // 128) * 128)
    while tile % chunk:
        chunk -= 128
    return chunk


# ------------------------------------ Pallas kernel ------------------------------------
def _make_kernel(C, TILE, CHUNK, HW_valid, masked):
    n_chunks = TILE // CHUNK

    def kernel(coef_ref, w_ref, beff_ref, x_ref, noise_ref, out_ref, acc_ref):
        # coef_ref : SMEM (3, B) f32 rows = [2*sqrt_ac[t_b], sqrt_1m_ac[t_b], p2_w[t_b]]
        # w_ref    : VMEM (C, C) f32 synthetic 1x1-conv weight (fed to the MXU)
        # beff_ref : VMEM (C, 1)  f32 per-batch effective bias (bias - sqrt_ac * W@1)
        # x_ref    : VMEM (C, TILE) raw image block for batch b (storage dtype)
        # noise_ref: VMEM (C, TILE)
        # out_ref  : VMEM (8, 128) f32 per-batch result block (value replicated)
        # acc_ref  : VMEM (C, CHUNK) f32 scratch, vector partial sums across the hw axis
        b = pl.program_id(0)
        j = pl.program_id(1)

        # per-batch scalars: read once per grid step from SMEM
        a_sc = coef_ref[0, b]
        c_sc = coef_ref[1, b]
        p2w = coef_ref[2, b]

        # hoisted loop invariants (broadcasts are not CSE'd if left inside the loop)
        wmat = w_ref[...]                                           # (C, C)
        beff = jnp.broadcast_to(beff_ref[...], (C, CHUNK))          # (C, CHUNK)
        a_v = jnp.full((C, CHUNK), a_sc, dtype=jnp.float32)
        c_v = jnp.full((C, CHUNK), c_sc, dtype=jnp.float32)

        def body(i, acc):
            s = pl.multiple_of(i * CHUNK, CHUNK)
            x = x_ref[:, pl.ds(s, CHUNK)].astype(jnp.float32)       # upcast in-kernel if bf16
            nz = noise_ref[:, pl.ds(s, CHUNK)].astype(jnp.float32)
            # normalize_to_neg_one_to_one + q_sample (constant shift folded into beff)
            x_t = a_v * x + c_v * nz
            # TODO(synk): the real denoising model is an external Unet passed to __init__;
            # a deterministic 1x1 conv (channel mix + bias) on the MXU stands in for it.
            mo = jnp.dot(wmat, x_t, preferred_element_type=jnp.float32) + beff
            mo = jnp.nan_to_num(mo)
            tgt = jnp.nan_to_num(nz)                                # objective == 'pred_noise'
            l1 = jnp.abs(mo - tgt)                                  # loss_type == 'l1'
            if masked:  # static flag: compiled out when HW is a multiple of 128
                col = j * TILE + s + jax.lax.broadcasted_iota(jnp.int32, (C, CHUNK), 1)
                l1 = jnp.where(col < HW_valid, l1, 0.0)
            return acc + l1

        step_sum = jax.lax.fori_loop(0, n_chunks, body,
                                     jnp.zeros((C, CHUNK), jnp.float32))

        # vector accumulation across the hw (reduction) axis; scalar reduction deferred
        @pl.when(j == 0)
        def _():
            acc_ref[...] = step_sum

        @pl.when(j > 0)
        def _():
            acc_ref[...] = acc_ref[...] + step_sum

        # finalize once per batch: single XLU reduction + p2 weighting
        @pl.when(j == pl.num_programs(1) - 1)
        def _():
            total = p2w * jnp.sum(acc_ref[...])
            out_ref[...] = jnp.full(out_ref.shape, total, dtype=out_ref.dtype)

    return kernel


def gaussian_diffusion_loss(img, noise, t, w, bias, consts, *, chunk_lanes=512):
    B, C, H, W = img.shape
    HW = H * W
    x = img.reshape(B, C, HW)
    nz = noise.reshape(B, C, HW)
    # NOTE: inputs are consumed in their storage dtype.  If the producer stores activations
    # in bf16, pass them through directly -- do NOT cast here (a wrapper-side astype is a
    # separate XLA pass and costs more HBM traffic than it saves inside the kernel).

    hw_pad = ((HW + 127) // 128) * 128
    masked = hw_pad != HW
    if masked:
        x = jnp.pad(x, ((0, 0), (0, 0), (0, hw_pad - HW)))
        nz = jnp.pad(nz, ((0, 0), (0, 0), (0, hw_pad - HW)))

    itemsize = np.dtype(x.dtype).itemsize
    vmem_bytes = _vmem_capacity_bytes()
    tile_hw = _pick_tile_hw(hw_pad, C, itemsize, vmem_bytes)
    chunk = _pick_chunk(tile_hw, chunk_lanes)
    n_hw = hw_pad // tile_hw

    # per-batch coefficient gather (the `extract(...)` calls)
    sa = consts["sqrt_alphas_cumprod"][t].astype(jnp.float32)             # (B,)
    s1 = consts["sqrt_one_minus_alphas_cumprod"][t].astype(jnp.float32)   # (B,)
    p2 = consts["p2_loss_weight"][t].astype(jnp.float32)                  # (B,)
    coefs = jnp.stack([2.0 * sa, s1, p2], axis=0)                         # (3, B) -> SMEM

    w32 = w.astype(jnp.float32)
    bias32 = bias.astype(jnp.float32)
    # fold the "-sqrt_ac" shift of normalize+q_sample through the linear model:
    #   model(a*x + c*n - sa) = W @ (a*x + c*n) + (bias - sa * (W @ 1))
    beff = (bias32[None, :] - sa[:, None] * jnp.sum(w32, axis=1)[None, :]).reshape(B, C, 1)

    cost = pl.CostEstimate(
        flops=int(B * C * hw_pad * (2 * C + 12)),
        transcendentals=0,
        bytes_accessed=int(2 * B * C * hw_pad * itemsize + B * 8 * 128 * 4),
    )

    kernel = _make_kernel(C, tile_hw, chunk, HW, masked)

    out = pl.pallas_call(
        kernel,
        out_shape=jax.ShapeDtypeStruct((B, 8, 128), jnp.float32),
        grid=(B, n_hw),
        in_specs=[
            pl.BlockSpec(memory_space=pltpu.SMEM),                         # coefs (3, B)
            pl.BlockSpec((C, C), lambda b, j: (0, 0)),                     # conv weight (VMEM)
            pl.BlockSpec((None, C, 1), lambda b, j: (b, 0, 0)),            # effective bias
            pl.BlockSpec((None, C, tile_hw), lambda b, j: (b, 0, j)),      # image block
            pl.BlockSpec((None, C, tile_hw), lambda b, j: (b, 0, j)),      # noise block
        ],
        out_specs=pl.BlockSpec((None, 8, 128), lambda b, j: (b, 0, 0)),
        scratch_shapes=[pltpu.VMEM((C, chunk), jnp.float32)],
        compiler_params=pltpu.CompilerParams(
            # TODO(synk): if B is 1 (or odd) on v7x, split the hw reduction over an extra
            # leading parallel axis and combine the partial sums in JAX to keep both TCs busy.
            dimension_semantics=("parallel", "arbitrary"),
            vmem_limit_bytes=int(vmem_bytes * 0.8),
        ),
        cost_estimate=cost,
    )(coefs, w32, beff, x, nz)

    per_batch = out[:, 0, 0]
    # loss = mean_b( p2_w[b] * mean_{c,h,w} l1 )  ==  sum_b(p2_w[b] * sum l1_b) / (B*C*H*W)
    return jnp.sum(per_batch) / (B * C * HW)


# --------------------------- pure-JAX reference (sanity check) ---------------------------
def reference_loss(img, noise, t, w, bias, consts):
    B, C, H, W = img.shape
    x0 = img.reshape(B, C, H * W) * 2.0 - 1.0
    n = noise.reshape(B, C, H * W)
    sa = consts["sqrt_alphas_cumprod"][t][:, None, None]
    s1 = consts["sqrt_one_minus_alphas_cumprod"][t][:, None, None]
    xt = sa * x0 + s1 * n
    mo = jnp.einsum("oc,bcn->bon", w, xt) + bias[None, :, None]
    mo = jnp.nan_to_num(mo)
    tgt = jnp.nan_to_num(n)
    l = jnp.abs(mo - tgt).reshape(B, -1)
    p2 = consts["p2_loss_weight"][t][:, None]
    return (l * p2).mean()


if __name__ == "__main__":
    B, C, H, W = 2, 4, 16, 16
    T = 1000

    key = jax.random.PRNGKey(0)
    k_img, k_noise, k_t, k_w = jax.random.split(key, 4)

    img = jax.random.uniform(k_img, (B, C, H, W), dtype=jnp.float32)     # raw image in [0, 1]
    noise = jax.random.normal(k_noise, (B, C, H, W), dtype=jnp.float32)  # randn_like(x_start)
    t = jax.random.randint(k_t, (B,), 0, T)                              # torch.randint(0, T, (b,))

    # deterministic synthetic "model" parameters (1x1 conv, channels -> channels)
    w = jax.random.normal(k_w, (C, C), dtype=jnp.float32) * 0.1
    bias = jnp.linspace(-0.05, 0.05, C, dtype=jnp.float32)

    # non-trivial p2 weighting so the weighting path is actually exercised
    consts = make_diffusion_constants(T, p2_loss_weight_gamma=1.0, p2_loss_weight_k=1.0)

    ref = reference_loss(img, noise, t, w, bias, consts)

    loss = gaussian_diffusion_loss(img, noise, t, w, bias, consts)
    jax.block_until_ready(loss)
    np.testing.assert_allclose(np.asarray(loss), np.asarray(ref), rtol=5e-3, atol=5e-3)

    print("KERNEL_OK")
</pallas_src>

<mosaic_0001>
module attributes {stable_mosaic.version = 11 : i64} {
  func.func @kernel(%arg0: i32, %arg1: i32, %arg2: memref<3x2xf32, #tpu.memory_space<smem>>, %arg3: memref<4x4xf32, #tpu.memory_space<vmem>>, %arg4: memref<1x4x1xf32, #tpu.memory_space<vmem>>, %arg5: memref<1x4x256xf32, #tpu.memory_space<vmem>>, %arg6: memref<1x4x256xf32, #tpu.memory_space<vmem>>, %arg7: memref<1x8x128xf32, #tpu.memory_space<vmem>>, %arg8: memref<4x256xf32, #tpu.memory_space<vmem>>) attributes {dimension_semantics = [#tpu.dimension_semantics<parallel>, #tpu.dimension_semantics<arbitrary>], iteration_bounds = array<i64: 2, 1>, scalar_prefetch = 0 : i64, scratch_operands = 1 : i64, tpu.core_type = #tpu.core_type<tc>, window_params = [{transform_indices = @transform_0, window_bounds = array<i64: 3, 2>}, {pipeline_mode = #tpu.pipeline_mode<synchronous>, transform_indices = @transform_1, window_bounds = array<i64: 4, 4>}, {transform_indices = @transform_2, window_bounds = array<i64: 1, 4, 1>}, {transform_indices = @transform_3, window_bounds = array<i64: 1, 4, 256>}, {transform_indices = @transform_4, window_bounds = array<i64: 1, 4, 256>}, {transform_indices = @transform_5, window_bounds = array<i64: 1, 8, 128>}]} {
    %c0 = arith.constant 0 : index
    %0 = arith.index_cast %arg0 : i32 to index
    %1 = memref.load %arg2[%c0, %0] : memref<3x2xf32, #tpu.memory_space<smem>>
    %c1 = arith.constant 1 : index
    %2 = arith.index_cast %arg0 : i32 to index
    %3 = memref.load %arg2[%c1, %2] : memref<3x2xf32, #tpu.memory_space<smem>>
    %c2 = arith.constant 2 : index
    %4 = arith.index_cast %arg0 : i32 to index
    %5 = memref.load %arg2[%c2, %4] : memref<3x2xf32, #tpu.memory_space<smem>>
    %c0_0 = arith.constant 0 : index
    %c0_1 = arith.constant 0 : index
    %6 = vector.load %arg3[%c0_0, %c0_1] : memref<4x4xf32, #tpu.memory_space<vmem>>, vector<4x4xf32>
    %c0_2 = arith.constant 0 : index
    %c0_3 = arith.constant 0 : index
    %c0_4 = arith.constant 0 : index
    %7 = vector.load %arg4[%c0_2, %c0_3, %c0_4] : memref<1x4x1xf32, #tpu.memory_space<vmem>>, vector<1x4x1xf32>
    %8 = vector.shape_cast %7 : vector<1x4x1xf32> to vector<4x1xf32>
    %9 = vector.shape_cast %8 : vector<4x1xf32> to vector<4x1xf32>
    %10 = vector.broadcast %9 : vector<4x1xf32> to vector<4x256xf32>
    %11 = vector.broadcast %1 : f32 to vector<4x256xf32>
    %12 = vector.broadcast %3 : f32 to vector<4x256xf32>
    %cst = arith.constant 0.000000e+00 : f32
    %13 = vector.broadcast %cst : f32 to vector<4x256xf32>
    %c0_i32 = arith.constant 0 : i32
    %c256_i32 = arith.constant 256 : i32
    %14 = arith.muli %c0_i32, %c256_i32 : i32
    %15 = tpu.assume_multiple %14, 256 : i32
    %c0_5 = arith.constant 0 : index
    %c0_6 = arith.constant 0 : index
    %16 = arith.index_cast %15 : i32 to index
    %17 = vector.load %arg5[%c0_5, %c0_6, %16] : memref<1x4x256xf32, #tpu.memory_space<vmem>>, vector<1x4x256xf32>
    %18 = vector.shape_cast %17 : vector<1x4x256xf32> to vector<4x256xf32>
    %c0_7 = arith.constant 0 : index
    %c0_8 = arith.constant 0 : index
    %19 = arith.index_cast %15 : i32 to index
    %20 = vector.load %arg6[%c0_7, %c0_8, %19] : memref<1x4x256xf32, #tpu.memory_space<vmem>>, vector<1x4x256xf32>
    %21 = vector.shape_cast %20 : vector<1x4x256xf32> to vector<4x256xf32>
    %22 = arith.mulf %11, %18 : vector<4x256xf32>
    %23 = arith.mulf %12, %21 : vector<4x256xf32>
    %24 = arith.addf %22, %23 : vector<4x256xf32>
    %cst_9 = arith.constant dense<0.000000e+00> : vector<4x256xf32>
    %25 = tpu.matmul %6, %24, %cst_9 {dimension_numbers = #tpu.dot_dimension_numbers<[1], [0], [0], [1], [0, 0, 1, 1], [], []>} : vector<4x4xf32>, vector<4x256xf32>, vector<4x256xf32> -> vector<4x256xf32>
    %26 = arith.addf %25, %10 : vector<4x256xf32>
    %27 = arith.cmpf one, %26, %26 : vector<4x256xf32>
    %cst_10 = arith.constant 0.000000e+00 : f32
    %28 = vector.broadcast %cst_10 : f32 to vector<4x256xf32>
    %29 = arith.select %27, %28, %26 : vector<4x256xi1>, vector<4x256xf32>
    %cst_11 = arith.constant 0x7F800000 : f32
    %30 = vector.broadcast %cst_11 : f32 to vector<4x256xf32>
    %31 = arith.cmpf oeq, %29, %30 : vector<4x256xf32>
    %cst_12 = arith.constant 3.40282347E+38 : f32
    %32 = vector.broadcast %cst_12 : f32 to vector<4x256xf32>
    %33 = arith.select %31, %32, %29 : vector<4x256xi1>, vector<4x256xf32>
    %cst_13 = arith.constant 0xFF800000 : f32
    %34 = vector.broadcast %cst_13 : f32 to vector<4x256xf32>
    %35 = arith.cmpf oeq, %33, %34 : vector<4x256xf32>
    %cst_14 = arith.constant -3.40282347E+38 : f32
    %36 = vector.broadcast %cst_14 : f32 to vector<4x256xf32>
    %37 = arith.select %35, %36, %33 : vector<4x256xi1>, vector<4x256xf32>
    %38 = arith.cmpf one, %21, %21 : vector<4x256xf32>
    %cst_15 = arith.constant 0.000000e+00 : f32
    %39 = vector.broadcast %cst_15 : f32 to vector<4x256xf32>
    %40 = arith.select %38, %39, %21 : vector<4x256xi1>, vector<4x256xf32>
    %cst_16 = arith.constant 0x7F800000 : f32
    %41 = vector.broadcast %cst_16 : f32 to vector<4x256xf32>
    %42 = arith.cmpf oeq, %40, %41 : vector<4x256xf32>
    %cst_17 = arith.constant 3.40282347E+38 : f32
    %43 = vector.broadcast %cst_17 : f32 to vector<4x256xf32>
    %44 = arith.select %42, %43, %40 : vector<4x256xi1>, vector<4x256xf32>
    %cst_18 = arith.constant 0xFF800000 : f32
    %45 = vector.broadcast %cst_18 : f32 to vector<4x256xf32>
    %46 = arith.cmpf oeq, %44, %45 : vector<4x256xf32>
    %cst_19 = arith.constant -3.40282347E+38 : f32
    %47 = vector.broadcast %cst_19 : f32 to vector<4x256xf32>
    %48 = arith.select %46, %47, %44 : vector<4x256xi1>, vector<4x256xf32>
    %49 = arith.subf %37, %48 : vector<4x256xf32>
    %50 = math.absf %49 : vector<4x256xf32>
    %51 = arith.addf %13, %50 : vector<4x256xf32>
    %c1_i32 = arith.constant 1 : i32
    %c0_i32_20 = arith.constant 0 : i32
    %52 = arith.cmpi eq, %arg1, %c0_i32_20 : i32
    %53 = arith.extui %52 : i1 to i32
    %c0_i32_21 = arith.constant 0 : i32
    %54 = arith.cmpi ne, %53, %c0_i32_21 : i32
    scf.if %54 {
      %c0_26 = arith.constant 0 : index
      %c0_27 = arith.constant 0 : index
      %61 = vector.load %arg8[%c0_26, %c0_27] : memref<4x256xf32, #tpu.memory_space<vmem>>, vector<4x256xf32>
      tpu.vector_store %arg8[%c0_26, %c0_27], %51 {strides = array<i32>} : memref<4x256xf32, #tpu.memory_space<vmem>>, vector<4x256xf32>,
    } else {
    }
    %c0_i32_22 = arith.constant 0 : i32
    %55 = arith.cmpi sgt, %arg1, %c0_i32_22 : i32
    %56 = arith.extui %55 : i1 to i32
    %c0_i32_23 = arith.constant 0 : i32
    %57 = arith.cmpi ne, %56, %c0_i32_23 : i32
    scf.if %57 {
      %c0_26 = arith.constant 0 : index
      %c0_27 = arith.constant 0 : index
      %61 = vector.load %arg8[%c0_26, %c0_27] : memref<4x256xf32, #tpu.memory_space<vmem>>, vector<4x256xf32>
      %62 = arith.addf %61, %51 : vector<4x256xf32>
      %c0_28 = arith.constant 0 : index
      %c0_29 = arith.constant 0 : index
      %63 = vector.load %arg8[%c0_28, %c0_29] : memref<4x256xf32, #tpu.memory_space<vmem>>, vector<4x256xf32>
      tpu.vector_store %arg8[%c0_28, %c0_29], %62 {strides = array<i32>} : memref<4x256xf32, #tpu.memory_space<vmem>>, vector<4x256xf32>,
    } else {
    }
    %c0_i32_24 = arith.constant 0 : i32
    %58 = arith.cmpi eq, %arg1, %c0_i32_24 : i32
    %59 = arith.extui %58 : i1 to i32
    %c0_i32_25 = arith.constant 0 : i32
    %60 = arith.cmpi ne, %59, %c0_i32_25 : i32
    scf.if %60 {
      %c0_26 = arith.constant 0 : index
      %c0_27 = arith.constant 0 : index
      %61 = vector.load %arg8[%c0_26, %c0_27] : memref<4x256xf32, #tpu.memory_space<vmem>>, vector<4x256xf32>
      %62 = vector.shape_cast %61 : vector<4x256xf32> to vector<1x4x256xf32>
      %cst_28 = arith.constant dense<0.000000e+00> : vector<1xf32>
      %63 = vector.multi_reduction <add>, %62, %cst_28 [1, 2] : vector<1x4x256xf32> to vector<1xf32>
      %64 = vector.shape_cast %63 : vector<1xf32> to vector<1x1x1xf32>
      %65 = vector.extract %64[0, 0, 0] : f32 from vector<1x1x1xf32>
      %66 = arith.mulf %5, %65 : f32
      %67 = vector.broadcast %66 : f32 to vector<8x128xf32>
      %c0_29 = arith.constant 0 : index
      %c0_30 = arith.constant 0 : index
      %c0_31 = arith.constant 0 : index
      %68 = vector.load %arg7[%c0_29, %c0_30, %c0_31] : memref<1x8x128xf32, #tpu.memory_space<vmem>>, vector<1x8x128xf32>
      %69 = vector.shape_cast %68 : vector<1x8x128xf32> to vector<8x128xf32>
      %70 = vector.shape_cast %67 : vector<8x128xf32> to vector<1x8x128xf32>
      tpu.vector_store %arg7[%c0_29, %c0_30, %c0_31], %70 {strides = array<i32>} : memref<1x8x128xf32, #tpu.memory_space<vmem>>, vector<1x8x128xf32>,
    } else {
    }
    return
  }
  func.func @transform_0(%arg0: i32, %arg1: i32) -> (i32, i32) {
    %c0_i32 = arith.constant 0 : i32
    %c0_i32_0 = arith.constant 0 : i32
    %c0_i32_1 = arith.constant 0 : i32
    return %c0_i32, %c0_i32_0 : i32, i32
  }
  func.func @transform_1(%arg0: i32, %arg1: i32) -> (i32, i32) {
    %c0_i32 = arith.constant 0 : i32
    %c0_i32_0 = arith.constant 0 : i32
    %c0_i32_1 = arith.constant 0 : i32
    return %c0_i32, %c0_i32_0 : i32, i32
  }
  func.func @transform_2(%arg0: i32, %arg1: i32) -> (i32, i32, i32) {
    %c0_i32 = arith.constant 0 : i32
    %c0_i32_0 = arith.constant 0 : i32
    %c0_i32_1 = arith.constant 0 : i32
    return %arg0, %c0_i32, %c0_i32_0 : i32, i32, i32
  }
  func.func @transform_3(%arg0: i32, %arg1: i32) -> (i32, i32, i32) {
    %c0_i32 = arith.constant 0 : i32
    %c0_i32_0 = arith.constant 0 : i32
    return %arg0, %c0_i32, %arg1 : i32, i32, i32
  }
  func.func @transform_4(%arg0: i32, %arg1: i32) -> (i32, i32, i32) {
    %c0_i32 = arith.constant 0 : i32
    %c0_i32_0 = arith.constant 0 : i32
    return %arg0, %c0_i32, %arg1 : i32, i32, i32
  }
  func.func @transform_5(%arg0: i32, %arg1: i32) -> (i32, i32, i32) {
    %c0_i32 = arith.constant 0 : i32
    %c0_i32_0 = arith.constant 0 : i32
    %c0_i32_1 = arith.constant 0 : i32
    return %arg0, %c0_i32, %c0_i32_0 : i32, i32, i32
  }
}

</mosaic_0001>

<bundles_post_ra>
// kernel: tpu_custom_call.1
= control target key start
LH: loop header
LB: loop body
LE: loop exit
PB: predicated region body
PF: predicated region fallthrough
CT: control target
= control target key end

     0   :  { %s1110_s0 = inlined_call_operand.vmem [shape: f32[3,2], index: 0, kind: input, shape index: {}]   ;;  %s1111_s1 = inlined_call_operand.vmem [shape: f32[4,4], index: 1, kind: input, shape index: {}]   ;;  %s1112_s2 = inlined_call_operand.vmem [shape: f32[2,4,1], index: 2, kind: input, shape index: {}]   ;;  %s1113_s3 = inlined_call_operand.vmem [shape: f32[2,4,256], index: 3, kind: input, shape index: {}]   ;;  %s1114_s4 = inlined_call_operand.hbm [shape: f32[2,4,256], index: 4, kind: input, shape index: {}]   ;;  %s1115_s5 = inlined_call_operand.hbm [shape: f32[2,8,128], index: 5, kind: output, shape index: {}]  }
   0x1   :  { %1119 = sst [smem:[#allocation13_spill]] %s1110_s0 }
   0x2   :  { %1120 = sst [smem:[#allocation14_spill]] %s1114_s4 }
   0x3   :  { %10 = vsyncpa [#allocation6], 0 }
   0x4   :  { %11 = vsyncpa [#allocation4], 0 }
   0x5   :  { %13 = vsyncpa [#allocation4 + $0x1], 0 }
   0x6   :  { %14 = vsyncpa [#allocation5], 0 }
   0x7   :  { %16 = vsyncpa [#allocation5 + $0x1], 0  ;;  %s913_s18 = smov 0   ;;  %s915_s19 = smov 0  }
   0x8   :  { %s917_s20 = smov 0   ;;  %s919_s21 = smov 0  }
   0x9   :  { %s921_s22 = smov 0   ;;  %s923_s23 = smov 0  }
   0xa LB: > { %s640_s24 = sadd.s32 4294967295, %s876_s23   ;;  %s641_s25 = sadd.s32 4294967294, %s876_s23   ;;  %s876_s23 = sphi %s923_s23, %s22_s23   ;;  %s872_s22 = sphi %s921_s22, %s1141_s22   ;;  %s868_s21 = sphi %s919_s21, %s1140_s21   ;;  %s864_s20 = sphi %s917_s20, %s1139_s20   ;;  %s860_s19 = sphi %s915_s19, %s1138_s19   ;;  %s856_s18 = sphi %s913_s18, %s1137_s18  }
   0xb   : > { %p152_p0 = scmp.ne.s32.totalorder %s860_s19, %s856_s18  ;;  %p947_p1 = scmp.eq.s32.totalorder %s640_s24, 0 }
   0xc   : > { %p951_p2 = scmp.eq.s32.totalorder %s640_s24, 1  ;;  %p182_p3 = scmp.eq.s32.totalorder %s641_s25, 1 }
   0xd   : > { %p957_p4 = por %p947_p1, %p152_p0  ;;  %p642_p5 = scmp.ge.s32.totalorder %s876_s23, 1 }
   0xe   : > { %p962_p6 = por %p182_p3, %p152_p0  ;;  %p189_p7 = scmp.lt.s32.totalorder %s876_s23, 3 }
   0xf   : > { %s1123_s28 = scalar_select %p957_p4, 1, 0 }
  0x10   : > { %s1124_s29 = scalar_select %p962_p6, 1, 0 }
  0x11   : > { %s1125_s0 = sld [smem:[#allocation13_spill]]  ;;  %p970_p8 = pnand %p642_p5, %p189_p7 }
  0x12   : > { %s34_s10 = sadd.s32 1, %s872_s22  ;;  %s139_s11 = sadd.s32 1, %s864_s20 }
  0x13   : > { %p681_p10 = pneg %p970_p8  ;;  %p36_p12 = scmp.ge.s32.totalorder %s34_s10, 2 }
  0x15   : > { %p979_p11 = pnand %p681_p10, %p947_p1 }
  0x17   : > { %s202_s7 = sshll.u32 %s1125_s0, 4  ;;  %p751_p0 = pneg %p979_p11  ;;  %s203_s7 = int_to_ptr.vmem [resolvable:$true] %s202_s7 }
  0x18   : > { %s749_s12 = scalar_lea.vmem %s203_s7, 64  ;;  %p757_p7 = scmp.lt.s32.totalorder %s203_s7, %s203_s7 }
  0x19   : > { %p750_p13 = scmp.ne.s32.totalorder %s203_s7, %s749_s12  ;;  %p758_p6 = scmp.lt.s32.totalorder %s749_s12, %s749_s12 }
  0x1b   : > { %p752_p3 = pnand %p751_p0, %p750_p13  ;;  %p759_p9 = por %p758_p6, %p757_p7 }
  0x1d   : > { %p753_p5 = pneg %p752_p3 }
  0x1f   : > { %p760_p4 = pnand %p759_p9, %p753_p5 }
  0x21   : > { %763 = shalt.err (!%p760_p4)
}
  0x22   : > { %s878_s13 = smov [#allocation3]   ;;  %s1143_s10 = smov (%p36_p12, %s34_s10), 0 }
  0x23   : > { %684 = dma.vmem_to_smem (!%p979_p11), %s203_s7, 64, %s878_s13, [#allocation6]  }
  0x24   : > { %1128 = sst [smem:[#allocation12_spill]] %s1143_s10  ;;  %p146_p10 = scmp.ne.s32.totalorder %s864_s20, %s860_s19 }
  0x25   : > { %p147_p6 = scmp.eq.s32.totalorder %s876_s23, 0  ;;  %s134_s14 = ssub.s32 %s872_s22, %s1143_s10 }
  0x26   : > { %p694_p4 = scmp.lt.s32.totalorder %s876_s23, 2  ;;  %p137_p9 = scmp.eq.s32.totalorder %s134_s14, 0 }
  0x27   : > { %p148_p13 = por %p147_p6, %p146_p10  ;;  %p999_p0 = por %p951_p2, %p146_p10 }
  0x28   : > { %s236_s16 = sand.u32 1, %s864_s20   ;;  %s664_s25 = sshll.u32 %s872_s22, 7 }
  0x29   : > { %s1005_s17 = scalar_select %p137_p9, %s864_s20, %s139_s11  }
  0x2a   : > { %s645_s24 = sshll.u32 %s236_s16, 3  ;;  %s1130_s4 = sld [smem:[#allocation14_spill]] }
  0x2b   : > { %s240_s9 = scalar_lea.vmem [#allocation7], %s645_s24  ;;  %p1011_p11 = pnand %p694_p4, %p148_p13 }
  0x2c   : > { %s250_s12 = sshll.u32 %s240_s9, 4  ;;  %s237_s27 = scalar_lea.sflag [#allocation4], %s236_s16  ;;  %s251_s12 = int_to_ptr.vmem [resolvable:$true] %s250_s12 }
  0x2d   : > { %p766_p2 = pneg %p1011_p11  ;;  %s777_s14 = scalar_lea.vmem %s251_s12, 128 }
  0x2e   : > { %p778_p12 = scmp.ne.s32.totalorder %s251_s12, %s777_s14  ;;  %s879_s11 = smov [#allocation7]  }
  0x2f   : > { %s782_s0 = sshll.u32 %s879_s11, 4  ;;  %s783_s0 = int_to_ptr.vmem [resolvable:$false] %s782_s0 }
  0x30   : > { %s248_s7 = scalar_lea.hbm %s1130_s4, %s664_s25  ;;  %p780_p3 = pnand %p778_p12, %p766_p2 }
  0x31   : > { %s784_s30 = scalar_lea.vmem %s783_s0, 256  ;;  %p785_p7 = scmp.lt.s32.totalorder %s251_s12, %s783_s0 }
  0x32   : > { %p781_p5 = pneg %p780_p3  ;;  %p786_p10 = scmp.lt.s32.totalorder %s784_s30, %s777_s14 }
  0x34   : > { %p787_p6 = por %p786_p10, %p785_p7 }
  0x36   : > { %p788_p9 = pnand %p787_p6, %p781_p5 }
  0x38   : > { %791 = shalt.err (!%p788_p9)
}
  0x39   : > { %688 = dma.hbm_to_vmem [thread:$0]  (!%p1011_p11), %s248_s7, 128, %s251_s12, %s237_s27  }
  0x3a   : > { %259 = sbr.rel (%p970_p8) target bundleno = 519 (0x207), region = 40 }
  0x3f   : > { %843 = dma.done.wait (%p947_p1), [#allocation6], 64  }
  0x40   : > { %845 = vsyncadd (%p947_p1), [#allocation6], 4294967232  ;;  %s1026_s16 = sand.u32 1, %s860_s19   ;;  %p1132_p4 = scmp.ne.s32.totalorder %s1123_s28, 0 }
  0x41   : > { %s1117_s0 = sshll.u32 %s1026_s16, 3  ;;  %s266_s24 = scalar_lea.sflag [#allocation4], %s1026_s16 }
  0x42   : > { %s269_s25 = scalar_lea.vmem [#allocation7], %s1117_s0 }
  0x43   : > { %847 = dma.done.wait (%p1132_p4), %s266_s24, 128  }
  0x44   : > { %849 = vsyncadd (%p1132_p4), %s266_s24, 4294967168 }
  0x45   : > { %274 = sfence }
  0x46   : > { %p310_p1 = scmp.lt.s32.totalorder %s868_s21, 1  ;;  %s325_s26 = sld [smem:[#allocation3 + %s868_s21]]  ;;  %v880_v0 = vmov 0.0   ;;  %v881_v1 = vmov 0   ;;  %v348_v5 = vld [vmem:[%s269_s25] sm:$0xff]  ;;  %vm358_vm0 = vcmask 1043456  }
  0x47   : > { %s326_s8 = sshra.s32 %s868_s21, 7  ;;  %s331_s6 = sand.u32 127, %s868_s21  ;;  %427 = vmatprep.mubr.f32.mxu0 %v880_v0  ;;  %748 = vset.pattern.permute.xlu0 %v881_v1  ;;  %v338_v11 = vld [vmem:[%s1111_s1] sm:$0xf]  ;;  %vm354_vm1 = vcmask 31744   ;;  %vm446_vm2 = vcmp.ne.f32.partialorder %v348_v5, %v348_v5 }
  0x48   : > { %s311_s7 = scalar_select %p310_p1, %s868_s21, 1  ;;  %v447_v12 = vsel %vm446_vm2, 0.0, %v348_v5 }
  0x49   : > { %s1041_s9 = sshll.u32 %s326_s8, 7  ;;  %vm448_vm3 = vcmp.eq.f32.partialorder %v447_v12, inf  ;;  %s661_s25 = sshll.u32 %s868_s21, 7 }
  0x4a   : > { %s665_s28 = sshll.u32 %s311_s7, 3  ;;  %s667_s12 = sadd.s32 128, %s1041_s9  ;;  %v449_v13 = vsel %vm448_vm3, 3.4028235e+38, %v447_v12 }
  0x4b   : > { %s322_s14 = scalar_lea.vmem %s1113_s3, %s665_s28  ;;  %s332_s11 = sadd.s32 %s667_s12, %s331_s6  ;;  %vm450_vm4 = vcmp.eq.f32.partialorder %v449_v13, -inf }
  0x4c   : > { %s333_s30 = sld [smem:[#allocation3 + %s332_s11]]  ;;  %s652_s24 = sshll.u32 %s311_s7, 2  ;;  %v345_v2 = vstv %s325_s26  ;;  %v347_v3 = vld [vmem:[%s322_s14] sm:$0xff]  ;;  %v451_v19 = vsel %vm450_vm4, -3.4028235e+38, %v449_v13 }
  0x4d   : > { %s313_s10 = scalar_lea.vmem %s1112_s2, %s652_s24  ;;  %v349_v6 = vmul.f32 %v347_v3, %v345_v2  ;;  %v453_v23 = vcombine.high %v451_v19, %v451_v19  ;;  %s669_s4 = sadd.s32 256, %s1041_s9 }
  0x4e   : > { %v339_v4 = vld [vmem:[%s313_s10] sm:$0xf]  ;;  %s336_s10 = sadd.s32 %s669_s4, %s331_s6  ;;  %s1133_s26 = sshll.u32 %s1026_s16, 3 }
  0x4f   : > { %342 = vperm.xlu0 %748, %v339_v4   ;;  %s337_s0 = sld [smem:[#allocation3 + %s336_s10]]  ;;  %s309_s7 = scalar_lea.vmem [#allocation8], %s1133_s26 }
  0x50   : > { %s517_s12 = sshll.u32 %s309_s7, 4  ;;  %s504_s24 = scalar_lea.sflag [#allocation5], %s1026_s16  ;;  %s518_s12 = int_to_ptr.vmem [resolvable:$true] %s517_s12 }
  0x51   : > { %s792_s8 = scalar_lea.vmem %s518_s12, 128  ;;  %s882_s21 = smov [#allocation8]  }
  0x52   : > { %v346_v7 = vstv %s333_s30  ;;  %s1068_s30 = scalar_lea.hbm %s1115_s5, %s661_s25  ;;  %p793_p8 = scmp.ne.s32.totalorder %s518_s12, %s792_s8 }
  0x53   : > { %v350_v8 = vmul.f32 %v348_v5, %v346_v7  ;;  %s796_s6 = sshll.u32 %s882_s21, 4  ;;  %s797_s6 = int_to_ptr.vmem [resolvable:$false] %s796_s6 }
  0x54   : > { %p794_p13 = pnand %p793_p8, %p999_p0  ;;  %s798_s9 = scalar_lea.vmem %s797_s6, 256 }
  0x55   : > { %v351_v9 = vadd.f32 %v350_v8, %v349_v6  ;;  %p799_p2 = scmp.lt.s32.totalorder %s518_s12, %s797_s6  ;;  %p800_p12 = scmp.lt.s32.totalorder %s798_s9, %s792_s8 }
  0x56   : > { %p795_p11 = pneg %p794_p13 }
  0x57   : > { %v353_v10 = vcombine.high %v351_v9, %v351_v9  ;;  %p801_p3 = por %p800_p12, %p799_p2 }
  0x59   : > { %657 = vmatprep.subr.msk.mxu0 %vm358_vm0, %v353_v10  ;;  %p802_p5 = pnand %p801_p3, %p795_p11 }
  0x5a   : > { %658 = vmatpush1.msk.msra.mxu0 %vm358_vm0, %v351_v9 }
  0x5b   : > { %659 = vmatmul.mubr.msk.f32.vlgmr.msra.gmra.mxu0 %vm354_vm1, %v338_v11 }
  0xca   : > { %v343_v14 = vpop.permute.xlu0 %342 }
 0x11b   : > { %v429_v15 = vpop.f32.mrf.mxu0 }
 0x11c   : > { %v430_v16 = vadd.f32 %v429_v15, %v343_v14 }
 0x11d   : > { %v431_v17 = vpop.f32.mrf.mxu0 }
 0x11e   : > { %vm434_vm5 = vcmp.ne.f32.partialorder %v430_v16, %v430_v16  ;;  %v432_v18 = vadd.f32 %v431_v17, %v343_v14 }
 0x11f   : > { %v436_v20 = vsel %vm434_vm5, 0.0, %v430_v16 }
 0x120   : > { %vm438_vm6 = vcmp.eq.f32.partialorder %v436_v20, inf  ;;  %vm435_vm7 = vcmp.ne.f32.partialorder %v432_v18, %v432_v18 }
 0x121   : > { %v440_v21 = vsel %vm438_vm6, 3.4028235e+38, %v436_v20  ;;  %v437_v22 = vsel %vm435_vm7, 0.0, %v432_v18 }
 0x122   : > { %vm442_vm8 = vcmp.eq.f32.partialorder %v440_v21, -inf  ;;  %vm439_vm9 = vcmp.eq.f32.partialorder %v437_v22, inf }
 0x123   : > { %v444_v24 = vsel %vm442_vm8, -3.4028235e+38, %v440_v21  ;;  %v441_v25 = vsel %vm439_vm9, 3.4028235e+38, %v437_v22 }
 0x124   : > { %v455_v26 = vsub.f32 %v444_v24, %v451_v19  ;;  %vm443_vm10 = vcmp.eq.f32.partialorder %v441_v25, -inf }
 0x125   : > { %v445_v27 = vsel %vm443_vm10, -3.4028235e+38, %v441_v25 }
 0x126   : > { %v456_v28 = vsub.f32 %v445_v27, %v453_v23  ;;  %v457_v30 = vand.u32 2147483647, %v455_v26 }
 0x128   : > { %v458_v29 = vand.u32 2147483647, %v456_v28 }
 0x12a   : > { %v467_v31 = vcombine.low %v457_v30, %v458_v29  ;;  %v670_v32 = vcombine.low %v458_v29, %v458_v29 }
 0x12c   : > { %v488_v33 = vsel %vm358_vm0, %v467_v31, 0.0  ;;  %v489_v34 = vsel %vm358_vm0, %v670_v32, 0.0 }
 0x12d   : > { %v490_v35 = vadd.f32 %v489_v34, %v488_v33 }
 0x12f   : > { %491 = vadd.xlane.f32.xlu0 %v490_v35 }
 0x1b8   : > { %v492_v36 = vpop.xlane.xlu0 %491 }
 0x1b9   : > { %v493_v37 = vrot.slane %v492_v36, 4 }
 0x1bb   : > { %v494_v38 = vadd.f32 %v493_v37, %v492_v36 }
 0x1bd   : > { %v495_v39 = vrot.slane %v494_v38, 2 }
 0x1bf   : > { %v496_v40 = vadd.f32 %v495_v39, %v494_v38 }
 0x1c1   : > { %v497_v41 = vrot.slane %v496_v40, 1 }
 0x1c3   : > { %v498_v42 = vadd.f32 %v497_v41, %v496_v40 }
 0x1c5   : > { %671 = vpush %v498_v42 }
 0x1f6   : > { %s672_s13 = spop %671 }
 0x1f7   : > { %s500_s27 = smul.f32 %s672_s13, %s337_s0 }
 0x1f9   : > { %v501_v43 = vstv %s500_s27 }
 0x1fa   : > { %502 = vst [vmem:[%s309_s7] sm:$0xff] %v501_v43 }
 0x1fb   : > { %805 = shalt.err (!%p802_p5)
}
 0x1fc   : > { %s806_s28 = scalar_lea.hbm %s1068_s30, 128  ;;  %s810_s10 = scalar_lea.hbm %s1115_s5, 256 }
 0x1fd   : > { %p807_p7 = scmp.ne.s32.totalorder %s1068_s30, %s806_s28  ;;  %p811_p9 = scmp.lt.s32.totalorder %s1068_s30, %s1115_s5 }
 0x1fe   : > { %p812_p4 = scmp.lt.s32.totalorder %s810_s10, %s806_s28 }
 0x1ff   : > { %p808_p10 = pnand %p807_p7, %p999_p0 }
 0x200   : > { %p813_p1 = por %p812_p4, %p811_p9 }
 0x201   : > { %p809_p6 = pneg %p808_p10 }
 0x203   : > { %p814_p8 = pnand %p813_p1, %p809_p6 }
 0x205   : > { %817 = shalt.err (!%p814_p8)
}
 0x206   : > { %679 = dma.vmem_to_hbm [thread:$0]  (%p999_p0), %s518_s12, 128, %s1068_s30, %s504_s24  }
 0x207 PF: > { %s529_s26 = sand.u32 1, %s856_s18   ;;  %p1134_p13 = scmp.ne.s32.totalorder %s1124_s29, 0 }
 0x208   : > { %p1135_p11 = scmp.ge.s32.totalorder %s876_s23, 2  ;;  %s530_s7 = scalar_lea.sflag [#allocation5], %s529_s26 }
 0x20a   : > { %p690_p2 = pnand %p1135_p11, %p1134_p13 }
 0x20c   : > { %p691_p12 = pneg %p690_p2 }
 0x20e   : > { %851 = dma.done.wait (%p691_p12), %s530_s7, 128  }
 0x20f   : > { %853 = vsyncadd (%p691_p12), %s530_s7, 4294967168  ;;  %s22_s23 = sadd.s32 1, %s876_s23   ;;  %s1136_s15 = sld [smem:[#allocation12_spill]] }
 0x210   : > { %p19_p3 = scmp.ge.s32.totalorder %s22_s23, 4   ;;  %s1137_s18 = smov %s860_s19 }
 0x211   : > { %s1138_s19 = smov %s864_s20  ;;  %s1139_s20 = smov %s1005_s17 }
 0x212   : > { %s1140_s21 = smov %s872_s22  ;;  %21 = sbr.rel (!%p19_p3) target bundleno = 10 (0xa), region = 108 }
 0x215   : > { %s1141_s22 = smov %s1136_s15 }
 0x217   :  { %535 = vsyncpa [#allocation4], 1 }
 0x218   :  { %537 = vsyncpa [#allocation4 + $0x1], 1 }
 0x219   :  { %538 = vsyncpa [#allocation5], 1 }
 0x21a   :  { %540 = vsyncpa [#allocation5 + $0x1], 1 }
 0x21b   :  { %541 = vsyncpa [#allocation6], 1 }
 0x21c   :  { %543 = vsyncpa [#allocation6 + $0x1], 1 }

</bundles_post_ra>
